<compile_context>
chip_gen: v7x
topology: tpu7x:2x2x1
jax: 0.10.0
libtpu: 0.0.40
codegen_flags: <defaults>
</compile_context>

<pallas_src>
import functools

import jax
import jax.numpy as jnp
from jax.experimental import pallas as pl
from jax.experimental.pallas import tpu as pltpu


# ---------------------------------------------------------------------------
# Kernels
# ---------------------------------------------------------------------------
def _nll_loss_kernel(pred_ref, tgt_ref, out_ref, acc_ref, *, n_rows):
    # pred_ref: (T, C) log-probs (any float dtype) in VMEM
    # tgt_ref:  (T, 1) int32 in VMEM
    # out_ref:  (1, 1) f32 in SMEM
    # acc_ref:  (1,)   f32 SMEM scratch (persists across grid steps)
    i = pl.program_id(0)

    @pl.when(i == 0)
    def _init():
        acc_ref[0] = jnp.float32(0.0)

    pred = pred_ref[...].astype(jnp.float32)          # in-vreg upcast (free on VPU)
    tgt = tgt_ref[...]                                # (T, 1) i32
    t, c = pred.shape

    class_ids = jax.lax.broadcasted_iota(jnp.int32, (t, c), 1)
    row_ids = jax.lax.broadcasted_iota(jnp.int32, (t, 1), 0) + i * t
    mask = (class_ids == tgt) & (row_ids < n_rows)     # one-hot, tail rows masked
    acc_ref[0] += jnp.sum(jnp.where(mask, pred, jnp.float32(0.0)))

    @pl.when(i == pl.num_programs(0) - 1)
    def _finalize():
        out_ref[0, 0] = -acc_ref[0] * jnp.float32(1.0 / n_rows)


def _nll_from_logits_kernel(logits_ref, tgt_ref, out_ref, acc_ref, *, n_rows):
    # Fused log_softmax + NLL:  loss_i = logsumexp(x_i) - x_i[target_i]
    i = pl.program_id(0)

    @pl.when(i == 0)
    def _init():
        acc_ref[0] = jnp.float32(0.0)

    x = logits_ref[...].astype(jnp.float32)           # (T, C)
    tgt = tgt_ref[...]                                # (T, 1)
    t, c = x.shape

    class_ids = jax.lax.broadcasted_iota(jnp.int32, (t, c), 1)
    row_ids = jax.lax.broadcasted_iota(jnp.int32, (t, 1), 0) + i * t
    row_valid = row_ids < n_rows                      # (T, 1)

    m = jnp.max(x, axis=-1, keepdims=True)                                   # XLU
    lse = m + jnp.log(jnp.sum(jnp.exp(x - m), axis=-1, keepdims=True))       # EUP
    picked = jnp.sum(jnp.where(class_ids == tgt, x, jnp.float32(0.0)),
                     axis=-1, keepdims=True)
    per_row = lse - picked                            # (T, 1) = -log_softmax[target]
    acc_ref[0] += jnp.sum(jnp.where(row_valid, per_row, jnp.float32(0.0)))

    @pl.when(i == pl.num_programs(0) - 1)
    def _finalize():
        out_ref[0, 0] = acc_ref[0] * jnp.float32(1.0 / n_rows)


# ---------------------------------------------------------------------------
# Wrappers
# ---------------------------------------------------------------------------
def _resolve_tile(n, c, itemsize, tile_n):
    """Largest row tile that keeps the double-buffered working set modest."""
    if tile_n is None:
        tile = min(n, 1024)
        budget = 8 * 1024 * 1024  # per-call VMEM working-set budget (headroom for v7x)
        # pred tile + 128-lane-padded target tile, both double-buffered.
        while tile > 8 and 2 * tile * (c * itemsize + 128 * 4) > budget:
            tile //= 2
    else:
        tile = tile_n
    tile = min(tile, n)
    if tile < n:
        tile = max(8, (tile // 8) * 8)  # (8, 128) block constraint on sublanes
    return tile


def _run(kernel_body, x, target, tile_n, transcendentals_per_elem):
    n, c = x.shape
    tile = _resolve_tile(n, c, x.dtype.itemsize, tile_n)
    target2d = target.astype(jnp.int32).reshape(n, 1)
    grid = (pl.cdiv(n, tile),)

    out = pl.pallas_call(
        functools.partial(kernel_body, n_rows=n),
        out_shape=jax.ShapeDtypeStruct((1, 1), jnp.float32),
        grid_spec=pltpu.PrefetchScalarGridSpec(
            num_scalar_prefetch=0,
            grid=grid,
            in_specs=[
                pl.BlockSpec((tile, c), lambda i: (i, 0)),
                pl.BlockSpec((tile, 1), lambda i: (i, 0)),
            ],
            out_specs=pl.BlockSpec(memory_space=pltpu.SMEM),
            scratch_shapes=[pltpu.SMEM((1,), jnp.float32)],
        ),
        compiler_params=pltpu.CompilerParams(
            dimension_semantics=("arbitrary",),
            vmem_limit_bytes=32 * 1024 * 1024,
        ),
        cost_estimate=pl.CostEstimate(
            flops=2 * n * c,
            transcendentals=transcendentals_per_elem * n * c,
            bytes_accessed=n * c * x.dtype.itemsize + n * 4 + 4,
        ),
    )(x, target2d)
    return out[0, 0]


def nll_loss(pred, target, tile_n=None):
    """Mean NLL over log-probabilities; matches F.nll_loss(pred, target)."""
    return _run(_nll_loss_kernel, pred, target, tile_n, transcendentals_per_elem=0)


def nll_loss_from_logits(logits, target, tile_n=None):
    """Fused log_softmax + mean NLL straight from logits (saves one HBM round trip)."""
    return _run(_nll_from_logits_kernel, logits, target, tile_n,
                transcendentals_per_elem=1)


# ---------------------------------------------------------------------------
# Test
# ---------------------------------------------------------------------------
if __name__ == "__main__":
    key = jax.random.PRNGKey(0)
    k1, k2, k3, k4 = jax.random.split(key, 4)

    # Case 1: tiny shapes consistent with the module (single block, tile == N).
    N1, C1 = 8, 16
    logits1 = jax.random.normal(k1, (N1, C1), dtype=jnp.float32)
    pred1 = jax.nn.log_softmax(logits1, axis=-1)
    target1 = jax.random.randint(k2, (N1,), 0, C1, dtype=jnp.int32)

    loss1 = jax.block_until_ready(nll_loss(pred1, target1))
    ref1 = -jnp.mean(pred1[jnp.arange(N1), target1])
    assert jnp.allclose(loss1, ref1, atol=1e-5, rtol=1e-5), (loss1, ref1)

    # Case 2: bf16 log-probs, multi-block grid with a ragged tail (tile_n=128).
    N2, C2 = 300, 40
    logits2 = jax.random.normal(k3, (N2, C2), dtype=jnp.float32)
    pred2 = jax.nn.log_softmax(logits2, axis=-1)
    target2 = jax.random.randint(k4, (N2,), 0, C2, dtype=jnp.int32)

    pred2_bf16 = pred2.astype(jnp.bfloat16)
    loss2 = jax.block_until_ready(nll_loss(pred2_bf16, target2, tile_n=128))
    ref2 = -jnp.mean(pred2_bf16.astype(jnp.float32)[jnp.arange(N2), target2])
    assert jnp.allclose(loss2, ref2, atol=2e-3, rtol=2e-3), (loss2, ref2)

    # Case 3: fused log_softmax + NLL from raw logits.
    loss3 = jax.block_until_ready(nll_loss_from_logits(logits2, target2, tile_n=128))
    ref3 = -jnp.mean(pred2[jnp.arange(N2), target2])
    assert jnp.allclose(loss3, ref3, atol=1e-5, rtol=1e-5), (loss3, ref3)

    print("KERNEL_OK")
</pallas_src>

<mosaic_0001>
module attributes {stable_mosaic.version = 11 : i64} {
  func.func @_nll_loss_kernel(%arg0: i32, %arg1: memref<8x16xf32, #tpu.memory_space<vmem>>, %arg2: memref<8x1xi32, #tpu.memory_space<vmem>>, %arg3: memref<1x1xf32, #tpu.memory_space<smem>>, %arg4: memref<1xf32, #tpu.memory_space<smem>>) attributes {dimension_semantics = [#tpu.dimension_semantics<arbitrary>], iteration_bounds = array<i64: 1>, scalar_prefetch = 0 : i64, scratch_operands = 1 : i64, tpu.core_type = #tpu.core_type<tc>, window_params = [{transform_indices = @transform_0, window_bounds = array<i64: 8, 16>}, {transform_indices = @transform_1, window_bounds = array<i64: 8, 1>}, {transform_indices = @transform_2, window_bounds = array<i64: 1, 1>}]} {
    %c0_i32 = arith.constant 0 : i32
    %0 = arith.cmpi eq, %arg0, %c0_i32 : i32
    %1 = arith.extui %0 : i1 to i32
    %c0_i32_0 = arith.constant 0 : i32
    %2 = arith.cmpi ne, %1, %c0_i32_0 : i32
    scf.if %2 {
      %cst_10 = arith.constant 0.000000e+00 : f32
      %c0_11 = arith.constant 0 : index
      %28 = memref.load %arg4[%c0_11] : memref<1xf32, #tpu.memory_space<smem>>
      memref.store %cst_10, %arg4[%c0_11] : memref<1xf32, #tpu.memory_space<smem>>
    } else {
    }
    %c0 = arith.constant 0 : index
    %c0_1 = arith.constant 0 : index
    %3 = vector.load %arg1[%c0, %c0_1] : memref<8x16xf32, #tpu.memory_space<vmem>>, vector<8x16xf32>
    %c0_2 = arith.constant 0 : index
    %c0_3 = arith.constant 0 : index
    %4 = vector.load %arg2[%c0_2, %c0_3] : memref<8x1xi32, #tpu.memory_space<vmem>>, vector<8x1xi32>
    %5 = tpu.iota {dimensions = array<i32: 1>} : vector<8x16xi32>
    %6 = tpu.iota {dimensions = array<i32: 0>} : vector<8x1xi32>
    %c8_i32 = arith.constant 8 : i32
    %7 = arith.muli %arg0, %c8_i32 : i32
    %8 = vector.broadcast %7 : i32 to vector<8x1xi32>
    %9 = arith.addi %6, %8 : vector<8x1xi32>
    %10 = vector.broadcast %4 : vector<8x1xi32> to vector<8x16xi32>
    %11 = arith.cmpi eq, %5, %10 : vector<8x16xi32>
    %c8_i32_4 = arith.constant 8 : i32
    %12 = vector.broadcast %c8_i32_4 : i32 to vector<8x1xi32>
    %13 = arith.cmpi slt, %9, %12 : vector<8x1xi32>
    %14 = vector.broadcast %13 : vector<8x1xi1> to vector<8x16xi1>
    %15 = arith.andi %11, %14 : vector<8x16xi1>
    %c0_5 = arith.constant 0 : index
    %16 = memref.load %arg4[%c0_5] : memref<1xf32, #tpu.memory_space<smem>>
    %cst = arith.constant 0.000000e+00 : f32
    %17 = vector.broadcast %cst : f32 to vector<8x16xf32>
    %18 = arith.select %15, %3, %17 : vector<8x16xi1>, vector<8x16xf32>
    %19 = vector.shape_cast %18 : vector<8x16xf32> to vector<1x8x16xf32>
    %cst_6 = arith.constant dense<0.000000e+00> : vector<1xf32>
    %20 = vector.multi_reduction <add>, %19, %cst_6 [1, 2] : vector<1x8x16xf32> to vector<1xf32>
    %21 = vector.shape_cast %20 : vector<1xf32> to vector<1x1x1xf32>
    %22 = vector.extract %21[0, 0, 0] : f32 from vector<1x1x1xf32>
    %23 = arith.addf %16, %22 : f32
    %c0_7 = arith.constant 0 : index
    %24 = memref.load %arg4[%c0_7] : memref<1xf32, #tpu.memory_space<smem>>
    memref.store %23, %arg4[%c0_7] : memref<1xf32, #tpu.memory_space<smem>>
    %c0_i32_8 = arith.constant 0 : i32
    %25 = arith.cmpi eq, %arg0, %c0_i32_8 : i32
    %26 = arith.extui %25 : i1 to i32
    %c0_i32_9 = arith.constant 0 : i32
    %27 = arith.cmpi ne, %26, %c0_i32_9 : i32
    scf.if %27 {
      %c0_10 = arith.constant 0 : index
      %28 = memref.load %arg4[%c0_10] : memref<1xf32, #tpu.memory_space<smem>>
      %cst_11 = arith.constant 0.000000e+00 : f32
      %29 = arith.subf %cst_11, %28 : f32
      %cst_12 = arith.constant 1.250000e-01 : f32
      %30 = arith.mulf %29, %cst_12 : f32
      %c0_13 = arith.constant 0 : index
      %c0_14 = arith.constant 0 : index
      %31 = memref.load %arg3[%c0_13, %c0_14] : memref<1x1xf32, #tpu.memory_space<smem>>
      memref.store %30, %arg3[%c0_13, %c0_14] : memref<1x1xf32, #tpu.memory_space<smem>>
    } else {
    }
    return
  }
  func.func @transform_0(%arg0: i32) -> (i32, i32) {
    %c0_i32 = arith.constant 0 : i32
    %c0_i32_0 = arith.constant 0 : i32
    return %arg0, %c0_i32 : i32, i32
  }
  func.func @transform_1(%arg0: i32) -> (i32, i32) {
    %c0_i32 = arith.constant 0 : i32
    %c0_i32_0 = arith.constant 0 : i32
    return %arg0, %c0_i32 : i32, i32
  }
  func.func @transform_2(%arg0: i32) -> (i32, i32) {
    %c0_i32 = arith.constant 0 : i32
    %c0_i32_0 = arith.constant 0 : i32
    %c0_i32_1 = arith.constant 0 : i32
    return %c0_i32, %c0_i32_0 : i32, i32
  }
}

</mosaic_0001>

<bundles_post_ra>
// kernel: tpu_custom_call.1
= control target key start
LH: loop header
LB: loop body
LE: loop exit
PB: predicated region body
PF: predicated region fallthrough
CT: control target
= control target key end

     0   :  { %s124_s0 = inlined_call_operand.vmem [shape: f32[8,16], index: 0, kind: input, shape index: {}]   ;;  %s125_s1 = inlined_call_operand.vmem [shape: s32[8,1], index: 1, kind: input, shape index: {}]   ;;  %s126_s2 = inlined_call_operand.hbm [shape: f32[1,1], index: 2, kind: output, shape index: {}]  }
   0x1   :  { %v19_v0 = vld [vmem:[%s125_s1] sm:$0xff] }
   0x2   :  { %7 = vsyncpa [#allocation4], 0  ;;  %v89_v1 = vmov 0   ;;  %v20_v2 = vlaneseq  ;;  %v18_v4 = vld [vmem:[%s124_s0] sm:$0xff]  ;;  %vm37_vm0 = vcmask 130048   ;;  %s77_s16 = scalar_lea.hbm %s126_s2, 16 }
   0x3   :  { %76 = vset.pattern.permute.xlu0 %v89_v1  ;;  %p78_p0 = scmp.ne.s32.totalorder %s126_s2, %s77_s16  ;;  %p81_p1 = scmp.lt.u32.totalorder %s77_s16, %s126_s2 }
   0x4   :  { %28 = vperm.xlu0 %76, %v19_v0   ;;  %v21_v3 = vand.u32 127, %v20_v2 }
   0x5   :  { %p83_p2 = pnand %p81_p1, %p78_p0 }
  0x83   :  { %v29_v5 = vpop.permute.xlu0 %28 }
  0x84   :  { %vm30_vm1 = vcmp.eq.s32.totalorder %v21_v3, %v29_v5 }
  0x85   :  { %v36_v6 = vsel %vm30_vm1, %v18_v4, 0.0 }
  0x86   :  { %v38_v7 = vsel %vm37_vm0, %v36_v6, 0.0 }
  0x87   :  { %39 = vadd.xlane.f32.xlu0 %v38_v7 }
 0x114   :  { %v40_v8 = vpop.xlane.xlu0 %39 }
 0x115   :  { %v41_v9 = vrot.slane %v40_v8, 4 }
 0x117   :  { %v42_v10 = vadd.f32 %v41_v9, %v40_v8 }
 0x119   :  { %v43_v11 = vrot.slane %v42_v10, 2 }
 0x11b   :  { %v44_v12 = vadd.f32 %v43_v11, %v42_v10 }
 0x11d   :  { %v45_v13 = vrot.slane %v44_v12, 1 }
 0x11f   :  { %v46_v14 = vadd.f32 %v45_v13, %v44_v12 }
 0x121   :  { %72 = vpush %v46_v14 }
 0x152   :  { %s73_s1 = spop %72 }
 0x153   :  { %s55_s13 = ssub.f32 0.0, %s73_s1 }
 0x155   :  { %s56_s14 = smul.f32 0.125, %s55_s13 }
 0x157   :  { %58 = sst [smem:[#allocation3]] %s56_s14 }
 0x158   :  { %86 = shalt.err (!%p83_p2)
}
 0x159   :  { %s90_s21 = smov [#allocation3]  }
 0x15a   :  { %66 = dma.smem_to_hbm %s90_s21, 16, %s126_s2, [#allocation4]  }
 0x15b   :  { %87 = dma.done.wait [#allocation4], 16  }
 0x15c   :  { %88 = vsyncadd [#allocation4], 4294967280 }
 0x15d   :  { %70 = sfence }
 0x15e   :  { %71 = vsyncpa [#allocation4], 1 }

</bundles_post_ra>
